<compile_context>
chip_gen: v6e
topology: v6e:2x2x1
jax: 0.10.0
libtpu: 0.0.40
codegen_flags: <defaults>
</compile_context>

<pallas_src>
import functools
import numpy as np
import jax
import jax.numpy as jnp
from jax import lax
from jax.experimental import pallas as pl
from jax.experimental.pallas import tpu as pltpu


def _round_up(x, m):
    return ((x + m - 1) // m) * m


def _erf(x):
    # Abramowitz & Stegun 7.1.26; |abs error| <= 1.5e-7 (f32-exact for gelu).
    # Uses only exp / mul / add / div so it is guaranteed to lower in Mosaic.
    p = np.float32(0.3275911)
    a1 = np.float32(0.254829592)
    a2 = np.float32(-0.284496736)
    a3 = np.float32(1.421413741)
    a4 = np.float32(-1.453152027)
    a5 = np.float32(1.061405429)
    ax = jnp.abs(x)
    t = 1.0 / (1.0 + p * ax)
    poly = ((((a5 * t + a4) * t + a3) * t + a2) * t + a1) * t
    y = 1.0 - poly * jnp.exp(-ax * ax)
    return jnp.where(x < 0, -y, y)


def _gelu_exact(x):
    return x * 0.5 * (1.0 + _erf(x * np.float32(1.0 / np.sqrt(2.0))))


def _lm_head_kernel(x_ref, wd_ref, bd_ref, g_ref, b_ref, embt_ref, bias_ref,
                    out_ref, hn_ref, *, eps, compute_dtype):
    # Grid: i = row tile (outer, "parallel"), j = vocab tile (inner, "arbitrary").
    # hn_ref: (tm, E) scratch in compute_dtype with the post-LayerNorm
    # activations of the current row tile; computed once at j == 0.
    @pl.when(pl.program_id(1) == 0)
    def _compute_transform():
        x = x_ref[...].astype(compute_dtype)
        # dense: x @ W_dense^T + b_dense   (MXU, f32 accumulation)
        h = jnp.dot(x, wd_ref[...], preferred_element_type=jnp.float32)
        h = h + bd_ref[...]
        # transform_act_fn: exact gelu  x * 0.5 * (1 + erf(x / sqrt(2)))
        h = _gelu_exact(h)
        # MaskedLayerNorm with no mask == plain LayerNorm over E, f32 math.
        mean = jnp.mean(h, axis=-1, keepdims=True)
        var = jnp.mean(jnp.square(h - mean), axis=-1, keepdims=True)
        hn = (h - mean) * lax.rsqrt(var + np.float32(eps))
        hn = hn * g_ref[...] + b_ref[...]
        hn_ref[...] = hn.astype(compute_dtype)

    # Vocab projection for this (row tile, vocab tile): hn @ embt + bias.
    logits = jnp.dot(hn_ref[...], embt_ref[...],
                     preferred_element_type=jnp.float32)
    out_ref[...] = (logits + bias_ref[...]).astype(out_ref.dtype)


def prepare_lm_head_weights(params, embedding_weight, *, param_dtype=jnp.bfloat16):
    """One-time parameter prep (transposes + casts hoisted out of the call path).

    params: dense_w [E, H] (torch layout), dense_b [E], ln_gamma [E],
            ln_beta [E], bias [V];  embedding_weight: [V, E] (torch layout).
    param_dtype: dtype of the two big matrices fed to the MXU.  bf16 (default)
      halves the HBM traffic of the E*V embedding stream; accumulation inside
      the kernel stays f32.  Small vectors stay f32.
    """
    wd = jnp.asarray(params["dense_w"]).T                    # [H, E]
    embt = jnp.asarray(embedding_weight).T                   # [E, V]
    if param_dtype is not None:
        wd = wd.astype(param_dtype)
        embt = embt.astype(param_dtype)
    E = wd.shape[1]
    V = embt.shape[1]
    f32 = jnp.float32
    return {
        "wd": wd,
        "bd": jnp.asarray(params["dense_b"], f32).reshape(1, E),
        "gamma": jnp.asarray(params["ln_gamma"], f32).reshape(1, E),
        "beta": jnp.asarray(params["ln_beta"], f32).reshape(1, E),
        "embt": embt,
        "bias": jnp.asarray(params["bias"], f32).reshape(1, V),
    }


def _vmem_cap_bytes():
    try:
        cap = int(pltpu.get_tpu_info().vmem_capacity_bytes)
    except Exception:
        cap = 64 << 20                      # conservative (v7x-sized) fallback
    return int(cap * 0.8)                   # headroom for Mosaic internal scratch


def _vmem_limit_bytes(tm, tn, H, E, x_dtype, w_dtype, out_dtype, cap):
    xb = np.dtype(x_dtype).itemsize
    wb = np.dtype(w_dtype).itemsize
    ob = np.dtype(out_dtype).itemsize
    est = 2 * (tm * H * xb          # hidden rows (double buffered)
               + H * E * wb         # dense weight
               + 3 * E * 4          # dense bias, LN gamma/beta
               + E * tn * wb        # embedding tile
               + tn * 4             # output-bias tile
               + tm * tn * ob)      # output tile
    est += tm * E * wb              # hn scratch (single buffer)
    est = int(est * 1.5) + (4 << 20)
    return max(min(est, cap), min(32 << 20, cap))


def bert_lm_prediction_head(hidden_states, prepared, *, eps=1e-7,
                            tm=None, tn=None, out_dtype=None):
    """hidden_states: [B, S, H]; prepared = prepare_lm_head_weights(...).

    out_dtype: logits dtype (defaults to hidden_states.dtype).  Pass
      jnp.bfloat16 to halve the M*V logits writeback when acceptable.
    """
    B, S, H = hidden_states.shape
    Hw, E = prepared["wd"].shape
    Ee, V = prepared["embt"].shape
    assert Hw == H and Ee == E
    w_dtype = prepared["embt"].dtype
    out_dtype = hidden_states.dtype if out_dtype is None else out_dtype

    M = B * S
    x = hidden_states.reshape(M, H)

    cap = _vmem_cap_bytes()
    # Sublane multiple: 16 keeps bf16 tiles packed; also fine for f32.
    sub = 16 if (np.dtype(w_dtype).itemsize < 4
                 or np.dtype(hidden_states.dtype).itemsize < 4) else 8

    # Row tile big enough that the weight-streaming vocab matmul is MXU-bound
    # (arithmetic intensity ~ 2*tm/itemsize flop per embedding byte):
    # 1024 on 128 MiB-VMEM parts (v5e/v6e), 512 on 64 MiB parts (v7x).
    if tm is None:
        tm = 1024 if cap > (80 << 20) else 512
    if tn is None:
        tn = 2048

    # Pad the (cheap) activation rows so the row tile never exceeds the array.
    M_pad = _round_up(M, sub)
    if M_pad != M:
        x = jnp.pad(x, ((0, M_pad - M), (0, 0)))

    tm = min(_round_up(tm, sub), M_pad)
    # Keep both TensorCores busy: megacore shards the "parallel" row axis.
    if M_pad >= 2 * sub and pl.cdiv(M_pad, tm) < 2:
        tm = _round_up(pl.cdiv(M_pad, 2), sub)
    # Vocab tile: lane-aligned (multiple of 128), never wider than the vocab;
    # last tile handled by the cdiv grid with masked reads/stores.
    if V < 128:
        tn = V
    else:
        tn = min(_round_up(tn, 128), (V // 128) * 128)

    grid = (pl.cdiv(M_pad, tm), pl.cdiv(V, tn))

    kernel = functools.partial(_lm_head_kernel, eps=float(eps),
                               compute_dtype=w_dtype)
    out = pl.pallas_call(
        kernel,
        out_shape=jax.ShapeDtypeStruct((M_pad, V), out_dtype),
        grid_spec=pltpu.PrefetchScalarGridSpec(
            num_scalar_prefetch=0,
            grid=grid,
            in_specs=[
                pl.BlockSpec((tm, H), lambda i, j: (i, 0)),   # hidden rows
                pl.BlockSpec((H, E), lambda i, j: (0, 0)),    # dense weight (pre-T)
                pl.BlockSpec((1, E), lambda i, j: (0, 0)),    # dense bias
                pl.BlockSpec((1, E), lambda i, j: (0, 0)),    # LN gamma
                pl.BlockSpec((1, E), lambda i, j: (0, 0)),    # LN beta
                pl.BlockSpec((E, tn), lambda i, j: (0, j)),   # embedding tile (pre-T)
                pl.BlockSpec((1, tn), lambda i, j: (0, j)),   # output-bias tile
            ],
            out_specs=pl.BlockSpec((tm, tn), lambda i, j: (i, j)),
            scratch_shapes=[pltpu.VMEM((tm, E), w_dtype)],
        ),
        compiler_params=pltpu.CompilerParams(
            dimension_semantics=("parallel", "arbitrary"),
            vmem_limit_bytes=_vmem_limit_bytes(
                tm, tn, H, E, x.dtype, w_dtype, out_dtype, cap),
        ),
    )(x, prepared["wd"], prepared["bd"], prepared["gamma"], prepared["beta"],
      prepared["embt"], prepared["bias"])

    if M_pad != M:
        out = out[:M]
    return out.reshape(B, S, V)


def _reference(hidden_states, params, embedding_weight, eps=1e-7):
    h = hidden_states @ params["dense_w"].T + params["dense_b"]
    h = h * 0.5 * (1.0 + lax.erf(h * np.float32(1.0 / np.sqrt(2.0))))
    mean = jnp.mean(h, axis=-1, keepdims=True)
    var = jnp.mean(jnp.square(h - mean), axis=-1, keepdims=True)
    h = (h - mean) / jnp.sqrt(var + eps)
    h = h * params["ln_gamma"] + params["ln_beta"]
    return h @ embedding_weight.T + params["bias"]


if __name__ == "__main__":
    eps = 1e-7   # DeBERTa layer_norm_eps default
    key = jax.random.PRNGKey(0)
    k_x, k_w, k_b, k_e, k_x2, k_w2, k_e2 = jax.random.split(key, 7)

    # --- Test 1: f32 params, evenly tiled shapes ---------------------------
    B, S, H, E, V = 2, 8, 32, 32, 512
    hidden_states = jax.random.normal(k_x, (B, S, H), dtype=jnp.float32)
    embedding_weight = jax.random.normal(k_e, (V, E), dtype=jnp.float32) * 0.02
    params = {
        "dense_w": jax.random.normal(k_w, (E, H), dtype=jnp.float32) * 0.02,
        "dense_b": jax.random.normal(k_b, (E,), dtype=jnp.float32) * 0.02,
        "ln_gamma": jnp.ones((E,), jnp.float32),
        "ln_beta": jnp.zeros((E,), jnp.float32),
        "bias": jax.random.normal(k_b, (V,), dtype=jnp.float32) * 0.02,
    }
    prepared = prepare_lm_head_weights(params, embedding_weight,
                                       param_dtype=jnp.float32)
    logits = jax.block_until_ready(
        bert_lm_prediction_head(hidden_states, prepared, eps=eps))
    ref = _reference(hidden_states, params, embedding_weight, eps=eps)
    assert logits.shape == (B, S, V)
    np.testing.assert_allclose(np.asarray(logits), np.asarray(ref),
                               rtol=1e-2, atol=1e-2)

    # --- Test 2: bf16 weights (default), non-divisible M and V -------------
    # M=18 (padded row tiles), V=500 (tn=384 -> 2 vocab tiles, masked last).
    B2, S2, H2, E2, V2 = 2, 9, 32, 64, 500
    hs2 = jax.random.normal(k_x2, (B2, S2, H2), dtype=jnp.float32)
    emb2 = jax.random.normal(k_e2, (V2, E2), dtype=jnp.float32) * 0.02
    params2 = {
        "dense_w": jax.random.normal(k_w2, (E2, H2), dtype=jnp.float32) * 0.02,
        "dense_b": jnp.zeros((E2,), jnp.float32),
        "ln_gamma": jnp.ones((E2,), jnp.float32),
        "ln_beta": jnp.zeros((E2,), jnp.float32),
        "bias": jnp.zeros((V2,), jnp.float32),
    }
    prepared2 = prepare_lm_head_weights(params2, emb2)   # bf16 by default
    out2 = jax.block_until_ready(
        bert_lm_prediction_head(hs2, prepared2, eps=eps))
    ref2 = _reference(hs2, params2, emb2, eps=eps)
    assert out2.shape == (B2, S2, V2)
    np.testing.assert_allclose(np.asarray(out2), np.asarray(ref2),
                               rtol=5e-2, atol=5e-2)

    print("KERNEL_OK")
</pallas_src>

<mosaic_0001>
module attributes {stable_mosaic.version = 11 : i64} {
  func.func @_lm_head_kernel(%arg0: i32, %arg1: i32, %arg2: memref<8x32xf32, #tpu.memory_space<vmem>>, %arg3: memref<32x32xf32, #tpu.memory_space<vmem>>, %arg4: memref<1x32xf32, #tpu.memory_space<vmem>>, %arg5: memref<1x32xf32, #tpu.memory_space<vmem>>, %arg6: memref<1x32xf32, #tpu.memory_space<vmem>>, %arg7: memref<32x512xf32, #tpu.memory_space<vmem>>, %arg8: memref<1x512xf32, #tpu.memory_space<vmem>>, %arg9: memref<8x512xf32, #tpu.memory_space<vmem>>, %arg10: memref<8x32xf32, #tpu.memory_space<vmem>>) attributes {dimension_semantics = [#tpu.dimension_semantics<parallel>, #tpu.dimension_semantics<arbitrary>], iteration_bounds = array<i64: 2, 1>, scalar_prefetch = 0 : i64, scratch_operands = 1 : i64, tpu.core_type = #tpu.core_type<tc>, window_params = [{transform_indices = @transform_0, window_bounds = array<i64: 8, 32>}, {pipeline_mode = #tpu.pipeline_mode<synchronous>, transform_indices = @transform_1, window_bounds = array<i64: 32, 32>}, {pipeline_mode = #tpu.pipeline_mode<synchronous>, transform_indices = @transform_2, window_bounds = array<i64: 1, 32>}, {pipeline_mode = #tpu.pipeline_mode<synchronous>, transform_indices = @transform_3, window_bounds = array<i64: 1, 32>}, {pipeline_mode = #tpu.pipeline_mode<synchronous>, transform_indices = @transform_4, window_bounds = array<i64: 1, 32>}, {transform_indices = @transform_5, window_bounds = array<i64: 32, 512>}, {transform_indices = @transform_6, window_bounds = array<i64: 1, 512>}, {transform_indices = @transform_7, window_bounds = array<i64: 8, 512>}]} {
    %c0_i32 = arith.constant 0 : i32
    %0 = arith.cmpi eq, %arg1, %c0_i32 : i32
    %1 = arith.extui %0 : i1 to i32
    %c0_i32_0 = arith.constant 0 : i32
    %2 = arith.cmpi ne, %1, %c0_i32_0 : i32
    scf.if %2 {
      %c0_8 = arith.constant 0 : index
      %c0_9 = arith.constant 0 : index
      %10 = vector.load %arg2[%c0_8, %c0_9] : memref<8x32xf32, #tpu.memory_space<vmem>>, vector<8x32xf32>
      %c0_10 = arith.constant 0 : index
      %c0_11 = arith.constant 0 : index
      %11 = vector.load %arg3[%c0_10, %c0_11] : memref<32x32xf32, #tpu.memory_space<vmem>>, vector<32x32xf32>
      %cst_12 = arith.constant dense<0.000000e+00> : vector<8x32xf32>
      %12 = tpu.matmul %10, %11, %cst_12 {dimension_numbers = #tpu.dot_dimension_numbers<[1], [0], [0], [1], [0, 0, 1, 1], [], []>} : vector<8x32xf32>, vector<32x32xf32>, vector<8x32xf32> -> vector<8x32xf32>
      %c0_13 = arith.constant 0 : index
      %c0_14 = arith.constant 0 : index
      %13 = vector.load %arg4[%c0_13, %c0_14] : memref<1x32xf32, #tpu.memory_space<vmem>>, vector<1x32xf32>
      %14 = vector.broadcast %13 : vector<1x32xf32> to vector<8x32xf32>
      %15 = arith.addf %12, %14 : vector<8x32xf32>
      %cst_15 = arith.constant 5.000000e-01 : f32
      %16 = vector.broadcast %cst_15 : f32 to vector<8x32xf32>
      %17 = arith.mulf %15, %16 : vector<8x32xf32>
      %cst_16 = arith.constant 0.707106769 : f32
      %18 = vector.broadcast %cst_16 : f32 to vector<8x32xf32>
      %19 = arith.mulf %15, %18 : vector<8x32xf32>
      %20 = math.absf %19 : vector<8x32xf32>
      %cst_17 = arith.constant 0.327591091 : f32
      %21 = vector.broadcast %cst_17 : f32 to vector<8x32xf32>
      %22 = arith.mulf %21, %20 : vector<8x32xf32>
      %cst_18 = arith.constant 1.000000e+00 : f32
      %23 = vector.broadcast %cst_18 : f32 to vector<8x32xf32>
      %24 = arith.addf %23, %22 : vector<8x32xf32>
      %cst_19 = arith.constant 1.000000e+00 : f32
      %25 = vector.broadcast %cst_19 : f32 to vector<8x32xf32>
      %26 = arith.divf %25, %24 : vector<8x32xf32>
      %cst_20 = arith.constant 1.06140542 : f32
      %27 = vector.broadcast %cst_20 : f32 to vector<8x32xf32>
      %28 = arith.mulf %27, %26 : vector<8x32xf32>
      %cst_21 = arith.constant -1.45315206 : f32
      %29 = vector.broadcast %cst_21 : f32 to vector<8x32xf32>
      %30 = arith.addf %28, %29 : vector<8x32xf32>
      %31 = arith.mulf %30, %26 : vector<8x32xf32>
      %cst_22 = arith.constant 1.42141378 : f32
      %32 = vector.broadcast %cst_22 : f32 to vector<8x32xf32>
      %33 = arith.addf %31, %32 : vector<8x32xf32>
      %34 = arith.mulf %33, %26 : vector<8x32xf32>
      %cst_23 = arith.constant -0.284496725 : f32
      %35 = vector.broadcast %cst_23 : f32 to vector<8x32xf32>
      %36 = arith.addf %34, %35 : vector<8x32xf32>
      %37 = arith.mulf %36, %26 : vector<8x32xf32>
      %cst_24 = arith.constant 0.254829586 : f32
      %38 = vector.broadcast %cst_24 : f32 to vector<8x32xf32>
      %39 = arith.addf %37, %38 : vector<8x32xf32>
      %40 = arith.mulf %39, %26 : vector<8x32xf32>
      %cst_25 = arith.constant 0.000000e+00 : f32
      %41 = vector.broadcast %cst_25 : f32 to vector<8x32xf32>
      %42 = arith.subf %41, %20 : vector<8x32xf32>
      %43 = arith.mulf %42, %20 : vector<8x32xf32>
      %44 = math.exp %43 : vector<8x32xf32>
      %45 = arith.mulf %40, %44 : vector<8x32xf32>
      %cst_26 = arith.constant 1.000000e+00 : f32
      %46 = vector.broadcast %cst_26 : f32 to vector<8x32xf32>
      %47 = arith.subf %46, %45 : vector<8x32xf32>
      %cst_27 = arith.constant 0.000000e+00 : f32
      %48 = vector.broadcast %cst_27 : f32 to vector<8x32xf32>
      %49 = arith.cmpf olt, %19, %48 : vector<8x32xf32>
      %cst_28 = arith.constant 0.000000e+00 : f32
      %50 = vector.broadcast %cst_28 : f32 to vector<8x32xf32>
      %51 = arith.subf %50, %47 : vector<8x32xf32>
      %52 = arith.select %49, %51, %47 : vector<8x32xi1>, vector<8x32xf32>
      %cst_29 = arith.constant 1.000000e+00 : f32
      %53 = vector.broadcast %cst_29 : f32 to vector<8x32xf32>
      %54 = arith.addf %53, %52 : vector<8x32xf32>
      %55 = arith.mulf %17, %54 : vector<8x32xf32>
      %cst_30 = arith.constant dense<0.000000e+00> : vector<8xf32>
      %56 = vector.multi_reduction <add>, %55, %cst_30 [1] : vector<8x32xf32> to vector<8xf32>
      %57 = vector.shape_cast %56 : vector<8xf32> to vector<8x1xf32>
      %cst_31 = arith.constant 3.200000e+01 : f32
      %58 = vector.broadcast %cst_31 : f32 to vector<8x1xf32>
      %59 = arith.divf %57, %58 : vector<8x1xf32>
      %60 = vector.broadcast %59 : vector<8x1xf32> to vector<8x32xf32>
      %61 = arith.subf %55, %60 : vector<8x32xf32>
      %62 = arith.mulf %61, %61 : vector<8x32xf32>
      %cst_32 = arith.constant dense<0.000000e+00> : vector<8xf32>
      %63 = vector.multi_reduction <add>, %62, %cst_32 [1] : vector<8x32xf32> to vector<8xf32>
      %64 = vector.shape_cast %63 : vector<8xf32> to vector<8x1xf32>
      %cst_33 = arith.constant 3.200000e+01 : f32
      %65 = vector.broadcast %cst_33 : f32 to vector<8x1xf32>
      %66 = arith.divf %64, %65 : vector<8x1xf32>
      %67 = vector.broadcast %59 : vector<8x1xf32> to vector<8x32xf32>
      %68 = arith.subf %55, %67 : vector<8x32xf32>
      %cst_34 = arith.constant 1.000000e-07 : f32
      %69 = vector.broadcast %cst_34 : f32 to vector<8x1xf32>
      %70 = arith.addf %66, %69 : vector<8x1xf32>
      %71 = math.rsqrt %70 : vector<8x1xf32>
      %72 = vector.broadcast %71 : vector<8x1xf32> to vector<8x32xf32>
      %73 = arith.mulf %68, %72 : vector<8x32xf32>
      %c0_35 = arith.constant 0 : index
      %c0_36 = arith.constant 0 : index
      %74 = vector.load %arg5[%c0_35, %c0_36] : memref<1x32xf32, #tpu.memory_space<vmem>>, vector<1x32xf32>
      %75 = vector.broadcast %74 : vector<1x32xf32> to vector<8x32xf32>
      %76 = arith.mulf %73, %75 : vector<8x32xf32>
      %c0_37 = arith.constant 0 : index
      %c0_38 = arith.constant 0 : index
      %77 = vector.load %arg6[%c0_37, %c0_38] : memref<1x32xf32, #tpu.memory_space<vmem>>, vector<1x32xf32>
      %78 = vector.broadcast %77 : vector<1x32xf32> to vector<8x32xf32>
      %79 = arith.addf %76, %78 : vector<8x32xf32>
      %c0_39 = arith.constant 0 : index
      %c0_40 = arith.constant 0 : index
      %80 = vector.load %arg10[%c0_39, %c0_40] : memref<8x32xf32, #tpu.memory_space<vmem>>, vector<8x32xf32>
      tpu.vector_store %arg10[%c0_39, %c0_40], %79 {strides = array<i32>} : memref<8x32xf32, #tpu.memory_space<vmem>>, vector<8x32xf32>,
    } else {
    }
    %c0 = arith.constant 0 : index
    %c0_1 = arith.constant 0 : index
    %3 = vector.load %arg10[%c0, %c0_1] : memref<8x32xf32, #tpu.memory_space<vmem>>, vector<8x32xf32>
    %c0_2 = arith.constant 0 : index
    %c0_3 = arith.constant 0 : index
    %4 = vector.load %arg7[%c0_2, %c0_3] : memref<32x512xf32, #tpu.memory_space<vmem>>, vector<32x512xf32>
    %cst = arith.constant dense<0.000000e+00> : vector<8x512xf32>
    %5 = tpu.matmul %3, %4, %cst {dimension_numbers = #tpu.dot_dimension_numbers<[1], [0], [0], [1], [0, 0, 1, 1], [], []>} : vector<8x32xf32>, vector<32x512xf32>, vector<8x512xf32> -> vector<8x512xf32>
    %c0_4 = arith.constant 0 : index
    %c0_5 = arith.constant 0 : index
    %6 = vector.load %arg8[%c0_4, %c0_5] : memref<1x512xf32, #tpu.memory_space<vmem>>, vector<1x512xf32>
    %7 = vector.broadcast %6 : vector<1x512xf32> to vector<8x512xf32>
    %8 = arith.addf %5, %7 : vector<8x512xf32>
    %c0_6 = arith.constant 0 : index
    %c0_7 = arith.constant 0 : index
    %9 = vector.load %arg9[%c0_6, %c0_7] : memref<8x512xf32, #tpu.memory_space<vmem>>, vector<8x512xf32>
    tpu.vector_store %arg9[%c0_6, %c0_7], %8 {strides = array<i32>} : memref<8x512xf32, #tpu.memory_space<vmem>>, vector<8x512xf32>,
    return
  }
  func.func @transform_0(%arg0: i32, %arg1: i32) -> (i32, i32) {
    %c0_i32 = arith.constant 0 : i32
    %c0_i32_0 = arith.constant 0 : i32
    return %arg0, %c0_i32 : i32, i32
  }
  func.func @transform_1(%arg0: i32, %arg1: i32) -> (i32, i32) {
    %c0_i32 = arith.constant 0 : i32
    %c0_i32_0 = arith.constant 0 : i32
    %c0_i32_1 = arith.constant 0 : i32
    return %c0_i32, %c0_i32_0 : i32, i32
  }
  func.func @transform_2(%arg0: i32, %arg1: i32) -> (i32, i32) {
    %c0_i32 = arith.constant 0 : i32
    %c0_i32_0 = arith.constant 0 : i32
    %c0_i32_1 = arith.constant 0 : i32
    return %c0_i32, %c0_i32_0 : i32, i32
  }
  func.func @transform_3(%arg0: i32, %arg1: i32) -> (i32, i32) {
    %c0_i32 = arith.constant 0 : i32
    %c0_i32_0 = arith.constant 0 : i32
    %c0_i32_1 = arith.constant 0 : i32
    return %c0_i32, %c0_i32_0 : i32, i32
  }
  func.func @transform_4(%arg0: i32, %arg1: i32) -> (i32, i32) {
    %c0_i32 = arith.constant 0 : i32
    %c0_i32_0 = arith.constant 0 : i32
    %c0_i32_1 = arith.constant 0 : i32
    return %c0_i32, %c0_i32_0 : i32, i32
  }
  func.func @transform_5(%arg0: i32, %arg1: i32) -> (i32, i32) {
    %c0_i32 = arith.constant 0 : i32
    %c0_i32_0 = arith.constant 0 : i32
    return %c0_i32, %arg1 : i32, i32
  }
  func.func @transform_6(%arg0: i32, %arg1: i32) -> (i32, i32) {
    %c0_i32 = arith.constant 0 : i32
    %c0_i32_0 = arith.constant 0 : i32
    return %c0_i32, %arg1 : i32, i32
  }
  func.func @transform_7(%arg0: i32, %arg1: i32) -> (i32, i32) {
    %c0_i32 = arith.constant 0 : i32
    return %arg0, %arg1 : i32, i32
  }
}

</mosaic_0001>

<bundles_post_ra>
// kernel: tpu_custom_call.1
= control target key start
LH: loop header
LB: loop body
LE: loop exit
PB: predicated region body
PF: predicated region fallthrough
CT: control target
= control target key end

     0   :  { %s1386_s0 = inlined_call_operand.hbm [shape: f32[16,32], index: 0, kind: input, shape index: {}]   ;;  %s1387_s1 = inlined_call_operand.hbm [shape: f32[32,32], index: 1, kind: input, shape index: {}]   ;;  %s1388_s2 = inlined_call_operand.vmem [shape: f32[1,32], index: 2, kind: input, shape index: {}]   ;;  %s1389_s3 = inlined_call_operand.vmem [shape: f32[1,32], index: 3, kind: input, shape index: {}]   ;;  %s1390_s4 = inlined_call_operand.vmem [shape: f32[1,32], index: 4, kind: input, shape index: {}]   ;;  %s1391_s5 = inlined_call_operand.hbm [shape: f32[32,512], index: 5, kind: input, shape index: {}]   ;;  %s1392_s6 = inlined_call_operand.vmem [shape: f32[1,512], index: 6, kind: input, shape index: {}]   ;;  %s1393_s7 = inlined_call_operand.hbm [shape: f32[16,512], index: 7, kind: output, shape index: {}]  }
   0x1   :  { %1398 = sst [smem:[#allocation14_spill]] %s1387_s1 }
   0x2   :  { %1399 = sst [smem:[#allocation15_spill]] %s1391_s5 }
   0x3   :  { %12 = vsyncpa [#allocation4], 0 }
   0x4   :  { %14 = vsyncpa [#allocation4 + $0x1], 0 }
   0x5   :  { %15 = vsyncpa [#allocation7], 0 }
   0x6   :  { %16 = vsyncpa [#allocation5], 0 }
   0x7   :  { %18 = vsyncpa [#allocation5 + $0x1], 0  ;;  %s1187_s24 = smov 0   ;;  %s1189_s25 = smov 0  }
   0x8   :  { %s1191_s26 = smov 0   ;;  %s1193_s27 = smov 0  }
   0x9   :  { %s1195_s28 = smov 0   ;;  %s1197_s29 = smov 0  }
   0xa LB: > { %s834_s30 = sadd.s32 4294967295, %s1135_s29   ;;  %s835_s8 = sadd.s32 4294967294, %s1135_s29   ;;  %s1135_s29 = sphi %s1197_s29, %s24_s29   ;;  %s1131_s28 = sphi %s1195_s28, %s1420_s28   ;;  %s1127_s27 = sphi %s1193_s27, %s1419_s27   ;;  %s1123_s26 = sphi %s1191_s26, %s1418_s26   ;;  %s1119_s25 = sphi %s1189_s25, %s1417_s25   ;;  %s1115_s24 = sphi %s1187_s24, %s1416_s24  }
   0xb   : > { %p56_p0 = scmp.ne.s32.totalorder %s1119_s25, %s1115_s24  ;;  %p1221_p1 = scmp.eq.s32.totalorder %s834_s30, 0 }
   0xc   : > { %p1225_p2 = scmp.eq.s32.totalorder %s834_s30, 1  ;;  %p224_p3 = scmp.eq.s32.totalorder %s835_s8, 1 }
   0xd   : > { %s1400_s9 = scalar_select %p1221_p1, 1, 0 }
   0xe   : > { %p1231_p4 = por %p1221_p1, %p56_p0  ;;  %p836_p5 = scmp.ge.s32.totalorder %s1135_s29, 1 }
   0xf   : > { %p1236_p6 = por %p224_p3, %p56_p0  ;;  %p231_p7 = scmp.lt.s32.totalorder %s1135_s29, 3 }
  0x10   : > { %s1402_s11 = scalar_select %p1231_p4, 1, 0 }
  0x11   : > { %s1403_s12 = scalar_select %p1236_p6, 1, 0 }
  0x12   : > { %p1241_p8 = pnand %p836_p5, %p231_p7  ;;  %s1137_s14 = smov [#allocation6]  }
  0x13   : > { %s243_s15 = sshll.u32 %s1137_s14, 4  ;;  %s1138_s17 = smov [#allocation8]   ;;  %s244_s15 = int_to_ptr.vmem [resolvable:$true] %s243_s15 }
  0x14   : > { %p888_p9 = pneg %p1241_p8  ;;  %s268_s18 = sshll.u32 %s1138_s17, 4  ;;  %s269_s18 = int_to_ptr.vmem [resolvable:$true] %s268_s18 }
  0x15   : > { %s982_s19 = scalar_lea.vmem %s244_s15, 512  ;;  %p990_p5 = scmp.lt.s32.totalorder %s244_s15, %s244_s15 }
  0x16   : > { %p1250_p11 = pnand %p888_p9, %p1221_p1  ;;  %p983_p13 = scmp.ne.s32.totalorder %s244_s15, %s982_s19 }
  0x17   : > { %p991_p7 = scmp.lt.s32.totalorder %s982_s19, %s982_s19 }
  0x18   : > { %p973_p12 = pneg %p1250_p11 }
  0x19   : > { %p992_p10 = por %p991_p7, %p990_p5 }
  0x1a   : > { %p985_p0 = pnand %p983_p13, %p973_p12 }
  0x1c   : > { %p986_p3 = pneg %p985_p0 }
  0x1e   : > { %p993_p9 = pnand %p992_p10, %p986_p3 }
  0x20   : > { %996 = shalt.err (!%p993_p9)
}
  0x21   : > { %s1139_s20 = smov 128   ;;  %s1140_s21 = smov 8  }
  0x22   : > { %s1406_s1 = sld [smem:[#allocation14_spill]]  ;;  %s1008_s30 = scalar_lea.vmem %s269_s18, 2048 }
  0x23   : > { %p1009_p6 = scmp.ne.s32.totalorder %s269_s18, %s1008_s30  ;;  %p1016_p1 = scmp.lt.s32.totalorder %s269_s18, %s269_s18 }
  0x24   : > { %p1017_p4 = scmp.lt.s32.totalorder %s1008_s30, %s1008_s30 }
  0x25   : > { %p1011_p13 = pnand %p1009_p6, %p973_p12 }
  0x26   : > { %p1018_p5 = por %p1017_p4, %p1016_p1 }
  0x27   : > { %p1012_p0 = pneg %p1011_p13 }
  0x28   : > { %891 = dma.hbm_to_vmem [thread:$0]  (!%p1250_p11), %s1406_s1, 512, %s244_s15, [#allocation7], %s1139_s20, %s1139_s20, %s1140_s21  }
  0x29   : > { %p1019_p10 = pnand %p1018_p5, %p1012_p0 }
  0x2b   : > { %1022 = shalt.err (!%p1019_p10)
}
  0x2c   : > { %s1141_s8 = smov 512   ;;  %s1142_s14 = smov 32  }
  0x2d   : > { %s1407_s5 = sld [smem:[#allocation15_spill]]  ;;  %s36_s19 = sadd.s32 1, %s1131_s28 }
  0x2e   : > { %s43_s20 = sadd.s32 1, %s1123_s26  ;;  %p38_p1 = scmp.ge.s32.totalorder %s36_s19, 2 }
  0x2f   : > { %p50_p4 = scmp.ne.s32.totalorder %s1123_s26, %s1119_s25  ;;  %p51_p6 = scmp.eq.s32.totalorder %s1135_s29, 0 }
  0x30   : > { %p905_p12 = scmp.lt.s32.totalorder %s1135_s29, 2  ;;  %s1422_s19 = smov (%p38_p1, %s36_s19), 0 }
  0x31   : > { %1408 = sst [smem:[#allocation13_spill]] %s1422_s19  ;;  %p52_p3 = por %p51_p6, %p50_p4 }
  0x32   : > { %p1282_p7 = por %p1225_p2, %p50_p4  ;;  %s40_s16 = ssub.s32 %s1131_s28, %s1422_s19 }
  0x33   : > { %894 = dma.hbm_to_vmem [thread:$0]  (!%p1250_p11), %s1407_s5, 2048, %s269_s18, [#allocation7], %s1141_s8, %s1141_s8, %s1142_s14  }
  0x34   : > { %s290_s22 = sand.u32 1, %s1123_s26   ;;  %p41_p9 = scmp.eq.s32.totalorder %s40_s16, 0 }
  0x35   : > { %s841_s18 = sshll.u32 %s290_s22, 3  ;;  %s842_s23 = sshll.u32 %s1131_s28, 7 }
  0x36   : > { %s1291_s30 = scalar_select %p41_p9, %s1123_s26, %s43_s20  }
  0x37   : > { %s299_s15 = scalar_lea.hbm %s1386_s0, %s842_s23  ;;  %s294_s17 = scalar_lea.vmem [#allocation3], %s841_s18 }
  0x38   : > { %s301_s1 = sshll.u32 %s294_s17, 4  ;;  %p1298_p11 = pnand %p905_p12, %p52_p3  ;;  %s302_s1 = int_to_ptr.vmem [resolvable:$true] %s301_s1 }
  0x39   : > { %s291_s5 = scalar_lea.sflag [#allocation4], %s290_s22  ;;  %s1036_s16 = scalar_lea.vmem %s302_s1, 128 }
  0x3a   : > { %p1025_p2 = pneg %p1298_p11  ;;  %p1037_p13 = scmp.ne.s32.totalorder %s302_s1, %s1036_s16 }
  0x3b   : > { %s1143_s20 = smov [#allocation3]  }
  0x3c   : > { %p1039_p0 = pnand %p1037_p13, %p1025_p2  ;;  %s1041_s19 = sshll.u32 %s1143_s20, 4  ;;  %s1042_s19 = int_to_ptr.vmem [resolvable:$false] %s1041_s19 }
  0x3d   : > { %s1043_s23 = scalar_lea.vmem %s1042_s19, 256  ;;  %p1044_p10 = scmp.lt.s32.totalorder %s302_s1, %s1042_s19 }
  0x3e   : > { %p1040_p5 = pneg %p1039_p0  ;;  %p1045_p1 = scmp.lt.s32.totalorder %s1043_s23, %s1036_s16 }
  0x40   : > { %p1046_p4 = por %p1045_p1, %p1044_p10 }
  0x42   : > { %p1047_p6 = pnand %p1046_p4, %p1040_p5 }
  0x44   : > { %1050 = shalt.err (!%p1047_p6)
}
  0x45   : > { %898 = dma.hbm_to_vmem [thread:$0]  (!%p1298_p11), %s299_s15, 128, %s302_s1, %s291_s5  }
  0x46   : > { %310 = sbr.rel (%p1241_p8) target bundleno = 860 (0x35c), region = 48  ;;  %s1309_s22 = sand.u32 (!%p1241_p8), 1, %s1119_s25  }
  0x47   : > { %s844_s18 = sshll.u32 (!%p1241_p8), %s1309_s22, 3  ;;  %s313_s8 = scalar_lea.sflag (!%p1241_p8), [#allocation4], %s1309_s22 }
  0x48   : > { %s316_s14 = scalar_lea.vmem (!%p1241_p8), [#allocation3], %s844_s18  ;;  %p1411_p12 = scmp.ne.s32.totalorder (!%p1241_p8), %s1402_s11, 0 }
  0x4b   : > { %1102 = dma.done.wait (%p1411_p12), %s313_s8, 128  }
  0x4c   : > { %1104 = vsyncadd (%p1411_p12), %s313_s8, 4294967168  ;;  %p1412_p3 = scmp.ne.s32.totalorder %s1400_s9, 0 }
  0x4e   : > { %1106 = dma.done.wait (%p1412_p3), [#allocation7], 2560  }
  0x4f   : > { %1108 = vsyncadd (%p1412_p3), [#allocation7], 4294964736  ;;  %v1144_v0 = vmov 0.0   ;;  %vm1145_vm0 = vmmov 0   ;;  %v374_v1 = vld [vmem:[#allocation6 + $0x18] sm:$0xff]  ;;  %v373_v2 = vld [vmem:[#allocation6 + $0x10] sm:$0xff] }
  0x50   : > { %865 = vmatprep.subr.mxu0 %v1144_v0  ;;  %873 = vmatprep.mubr.msk.f32.mxu0 %vm1145_vm0, %v1144_v0  ;;  %v372_v3 = vld [vmem:[#allocation6 + $0x8] sm:$0xff]  ;;  %v371_v4 = vld [vmem:[#allocation6] sm:$0xff]  ;;  %v370_v5 = vld [vmem:[%s316_s14] sm:$0xff]  ;;  %vm382_vm1 = vcmask 261120   ;;  %s847_s15 = sshll.u32 %s1309_s22, 5  ;;  %s859_s16 = sshll.u32 %s1127_s27, 9 }
  0x51   : > { %621 = vmatprep.mubr.f32.mxu1 %v1144_v0  ;;  %866 = vmatpush3.msra.mxu0 %v374_v1  ;;  %v848_v6 = vld [vmem:[%s1388_s2] ss:$0 sm:$0xff]  ;;  %v530_v42 = vld [vmem:[#allocation8 + $0x78] sm:$0xff]  ;;  %v527_v43 = vld [vmem:[#allocation8 + $0x60] sm:$0xff]  ;;  %s358_s20 = scalar_lea.vmem [#allocation9], %s847_s15  ;;  %s1344_s14 = scalar_lea.hbm %s1393_s7, %s859_s16 }
  0x52   : > { %867 = vmatprep.subr.mxu0 %v1144_v0  ;;  %v528_v41 = vld [vmem:[#allocation8 + $0x68] sm:$0xff]  ;;  %v529_v44 = vld [vmem:[#allocation8 + $0x70] sm:$0xff]  ;;  %v526_v46 = vld [vmem:[#allocation8 + $0x58] sm:$0xff]  ;;  %s720_s23 = sshll.u32 %s358_s20, 4  ;;  %s704_s27 = scalar_lea.sflag [#allocation5], %s1309_s22  ;;  %s721_s23 = int_to_ptr.vmem [resolvable:$true] %s720_s23 }
  0x53   : > { %868 = vmatpush3.msra.mxu0 %v373_v2  ;;  %581 = vmatprep.subr.mxu1 %v528_v41  ;;  %v524_v45 = vld [vmem:[#allocation8 + $0x48] sm:$0xff]  ;;  %v523_v47 = vld [vmem:[#allocation8 + $0x40] sm:$0xff]  ;;  %v525_v48 = vld [vmem:[#allocation8 + $0x50] sm:$0xff]  ;;  %s1051_s1 = scalar_lea.vmem %s721_s23, 512  ;;  %s1146_s5 = smov [#allocation9]  }
  0x54   : > { %869 = vmatprep.subr.mxu0 %v1144_v0  ;;  %582 = vmatpush1.msra.mxu1 %v527_v43  ;;  %v520_v49 = vld [vmem:[#allocation8 + $0x28] sm:$0xff]  ;;  %v522_v50 = vld [vmem:[#allocation8 + $0x38] sm:$0xff]  ;;  %v519_v51 = vld [vmem:[#allocation8 + $0x20] sm:$0xff]  ;;  %p1052_p8 = scmp.ne.s32.totalorder %s721_s23, %s1051_s1  ;;  %s1055_s9 = sshll.u32 %s1146_s5, 4  ;;  %s1056_s9 = int_to_ptr.vmem [resolvable:$false] %s1055_s9 }
  0x55   : > { %870 = vmatpush3.msra.mxu0 %v372_v3  ;;  %583 = vmatprep.subr.mxu1 %v524_v45  ;;  %v521_v52 = vld [vmem:[#allocation8 + $0x30] sm:$0xff]  ;;  %v516_v53 = vld [vmem:[#allocation8 + $0x8] sm:$0xff]  ;;  %v518_v54 = vld [vmem:[#allocation8 + $0x18] sm:$0xff]  ;;  %v533_v3 = vlaneseq  ;;  %s1057_s11 = scalar_lea.vmem %s1056_s9, 1024  ;;  %p1058_p2 = scmp.lt.s32.totalorder %s721_s23, %s1056_s9 }
  0x56   : > { %871 = vmatprep.subr.mxu0 %v1144_v0  ;;  %584 = vmatpush1.msra.mxu1 %v523_v47  ;;  %v515_v55 = vld [vmem:[#allocation8] sm:$0xff]  ;;  %v517_v56 = vld [vmem:[#allocation8 + $0x10] sm:$0xff]  ;;  %v850_v61 = vld [vmem:[%s1389_s3] ss:$0 sm:$0xff]  ;;  %p1053_p9 = pnand %p1052_p8, %p1282_p7  ;;  %p1059_p13 = scmp.lt.s32.totalorder %s1057_s11, %s1051_s1 }
  0x57   : > { %872 = vmatpush3.msra.mxu0 %v371_v4  ;;  %585 = vmatprep.subr.mxu1 %v520_v49  ;;  %v851_v63 = vld [vmem:[%s1390_s4] ss:$0 sm:$0xff]  ;;  %v534_v4 = vshrl.u32 %v533_v3, 7 }
  0x58   : > { %874 = vmatmul.mubr.msk.f32.vlgmr.msra.gmra.mxu0 %vm382_vm1, %v370_v5  ;;  %652 = vmatprep.subr.mxu0 %v530_v42  ;;  %p1054_p11 = pneg %p1053_p9  ;;  %p1060_p0 = por %p1059_p13, %p1058_p2 }
  0x59   : > { %692 = vmatprep.mubr.f32.mxu0 %v1144_v0  ;;  %653 = vmatpush1.msra.mxu0 %v529_v44  ;;  %v535_v5 = vsub.s32 0, %v534_v4 }
  0x5a   : > { %654 = vmatprep.subr.mxu0 %v526_v46  ;;  %586 = vmatpush1.msra.mxu1 %v519_v51  ;;  %p1061_p5 = pnand %p1060_p0, %p1054_p11 }
  0x5b   : > { %655 = vmatpush1.msra.mxu0 %v525_v48  ;;  %587 = vmatprep.subr.mxu1 %v516_v53 }
  0x5c   : > { %656 = vmatprep.subr.mxu0 %v522_v50  ;;  %588 = vmatpush1.msra.mxu1 %v515_v55 }
  0x5d   : > { %657 = vmatpush1.msra.mxu0 %v521_v52 }
  0x5e   : > { %658 = vmatprep.subr.mxu0 %v518_v54 }
  0x5f   : > { %659 = vmatpush1.msra.mxu0 %v517_v56 }
 0x118   : > { %v452_v7 = vpop.f32.mrf.mxu0 }
 0x119   : > { %v453_v8 = vadd.f32 %v848_v6, %v452_v7  ;;  %v543_v6 = vsub.s32 2, %v534_v4  ;;  %v531_v7 = vld [vmem:[%s1392_s6] sm:$0xf] }
 0x11a   : > { %v875_v9 = vpop.f32.mrf.mxu0 }
 0x11b   : > { %v457_v10 = vmul.f32 0.70710677, %v453_v8  ;;  %v456_v32 = vmul.f32 0.5, %v453_v8  ;;  %v539_v8 = vsub.s32 1, %v534_v4  ;;  %v547_v9 = vsub.s32 3, %v534_v4 }
 0x11d   : > { %v458_v11 = vand.u32 2147483647, %v457_v10  ;;  %vm478_vm2 = vcmp.lt.f32.partialorder %v457_v10, 0.0  ;;  %v536_v10 = vrot.slane %v531_v7, %v535_v5 }
 0x11f   : > { %v459_v12 = vmul.f32 0.3275911, %v458_v11  ;;  %v472_v14 = vsub.f32 0.0, %v458_v11 }
 0x121   : > { %v460_v13 = vadd.f32 1.0, %v459_v12  ;;  %v473_v15 = vmul.f32 %v472_v14, %v458_v11  ;;  %v544_v11 = vrot.slane %v531_v7, %v543_v6  ;;  %v540_v12 = vrot.slane %v531_v7, %v539_v8 }
 0x123   : > { %965 = vrcp.f32 %v460_v13  ;;  %v474_v17 = vmul.f32 1.442695, %v473_v15  ;;  %v548_v13 = vrot.slane %v531_v7, %v547_v9 }
 0x125   : > { %967 = vpow2.f32 %v474_v17 }
 0x130   : > { %v966_v16 = vpop.eup %965 }
 0x131   : > { %v463_v18 = vmul.f32 1.0614054, %v966_v16 }
 0x132   : > { %v968_v27 = vpop.eup %967 }
 0x133   : > { %v464_v19 = vadd.f32 -1.4531521, %v463_v18 }
 0x135   : > { %v465_v20 = vmul.f32 %v966_v16, %v464_v19 }
 0x137   : > { %v466_v21 = vadd.f32 1.4214138, %v465_v20 }
 0x139   : > { %v467_v22 = vmul.f32 %v966_v16, %v466_v21 }
 0x13b   : > { %v468_v23 = vadd.f32 -0.28449672, %v467_v22 }
 0x13d   : > { %v469_v24 = vmul.f32 %v966_v16, %v468_v23 }
 0x13f   : > { %v470_v25 = vadd.f32 0.2548296, %v469_v24 }
 0x141   : > { %v471_v26 = vmul.f32 %v966_v16, %v470_v25 }
 0x143   : > { %v476_v28 = vmul.f32 %v968_v27, %v471_v26 }
 0x145   : > { %v477_v29 = vsub.f32 1.0, %v476_v28 }
 0x147   : > { %v479_v30 = vsub.f32 0.0, %v477_v29 }
 0x149   : > { %v480_v31 = vsel %vm478_vm2, %v479_v30, %v477_v29 }
 0x14a   : > { %v481_v33 = vadd.f32 1.0, %v480_v31 }
 0x14c   : > { %v482_v34 = vmul.f32 %v481_v33, %v456_v32 }
 0x14e   : > { %v483_v35 = vsel %vm382_vm1, %v482_v34, 0.0 }
 0x14f   : > { %484 = vadd.xlane.f32.xlu0 %v483_v35 }
 0x1d8   : > { %v485_v36 = vpop.xlane.xlu0 %484 }
 0x1d9   : > { %v487_v37 = vmul.f32 0.03125, %v485_v36 }
 0x1db   : > { %v488_v38 = vsub.f32 %v482_v34, %v487_v37 }
 0x1dd   : > { %v489_v39 = vmul.f32 %v488_v38, %v488_v38 }
 0x1df   : > { %v490_v40 = vsel %vm382_vm1, %v489_v39, 0.0 }
 0x1e0   : > { %491 = vadd.xlane.f32.xlu0 %v490_v40 }
 0x269   : > { %v492_v57 = vpop.xlane.xlu0 %491 }
 0x26a   : > { %v493_v58 = vmul.f32 0.03125, %v492_v57 }
 0x26c   : > { %v494_v59 = vadd.f32 1e-07, %v493_v58 }
 0x26e   : > { %969 = vrsqrt.f32 %v494_v59 }
 0x27b   : > { %v970_v60 = vpop.eup %969 }
 0x27c   : > { %v496_v62 = vmul.f32 %v970_v60, %v488_v38 }
 0x27e   : > { %v504_v0 = vmul.f32 %v850_v61, %v496_v62 }
 0x280   : > { %v512_v1 = vadd.f32 %v851_v63, %v504_v0 }
 0x282   : > { %513 = vst.msk [vmem:[#allocation2] sm:$0xff] %vm382_vm1, %v512_v1 }
 0x289   : > { %v514_v2 = vld [vmem:[#allocation2] sm:$0xff] }
 0x28a   : > { %852 = vmatmul.mubr.msk.f32.vlgmr.msra.gmra.mxu1 %vm382_vm1, %v514_v2  ;;  %853 = vmatmul.mubr.msk.f32.vlgmr.msra.gmra.mxu0 %vm382_vm1, %v514_v2 }
 0x34a   : > { %v623_v14 = vpop.f32.mrf.mxu1  ;;  %v694_v15 = vpop.f32.mrf.mxu0 }
 0x34b   : > { %v624_v16 = vadd.f32 %v623_v14, %v536_v10  ;;  %v695_v17 = vadd.f32 %v694_v15, %v544_v11 }
 0x34c   : > { %v625_v18 = vpop.f32.mrf.mxu1  ;;  %v696_v19 = vpop.f32.mrf.mxu0 }
 0x34d   : > { %699 = vst [vmem:[%s358_s20] sm:$0xff] %v624_v16  ;;  %701 = vst [vmem:[%s358_s20 + $0x10] sm:$0xff] %v695_v17  ;;  %v626_v20 = vadd.f32 %v625_v18, %v540_v12  ;;  %v697_v21 = vadd.f32 %v696_v19, %v548_v13 }
 0x34f   : > { %700 = vst [vmem:[%s358_s20 + $0x8] sm:$0xff] %v626_v20  ;;  %702 = vst [vmem:[%s358_s20 + $0x18] sm:$0xff] %v697_v21 }
 0x350   : > { %1064 = shalt.err (!%p1061_p5)
}
 0x351   : > { %s1065_s13 = scalar_lea.hbm %s1344_s14, 512  ;;  %s1069_s15 = scalar_lea.hbm %s1393_s7, 1024 }
 0x352   : > { %p1066_p10 = scmp.ne.s32.totalorder %s1344_s14, %s1065_s13  ;;  %p1070_p6 = scmp.lt.s32.totalorder %s1344_s14, %s1393_s7 }
 0x353   : > { %p1071_p12 = scmp.lt.s32.totalorder %s1069_s15, %s1065_s13 }
 0x354   : > { %p1067_p1 = pnand %p1066_p10, %p1282_p7 }
 0x355   : > { %p1072_p3 = por %p1071_p12, %p1070_p6 }
 0x356   : > { %p1068_p4 = pneg %p1067_p1 }
 0x358   : > { %p1073_p8 = pnand %p1072_p3, %p1068_p4 }
 0x35a   : > { %1076 = shalt.err (!%p1073_p8)
}
 0x35b   : > { %886 = dma.vmem_to_hbm [thread:$0]  (%p1282_p7), %s721_s23, 512, %s1344_s14, %s704_s27  }
 0x35c PF: > { %s732_s16 = sand.u32 1, %s1115_s24   ;;  %p1413_p9 = scmp.ne.s32.totalorder %s1403_s12, 0 }
 0x35d   : > { %p1414_p11 = scmp.ge.s32.totalorder %s1135_s29, 2  ;;  %s733_s20 = scalar_lea.sflag [#allocation5], %s732_s16 }
 0x35f   : > { %p900_p2 = pnand %p1414_p11, %p1413_p9 }
 0x361   : > { %p901_p13 = pneg %p900_p2 }
 0x363   : > { %1110 = dma.done.wait (%p901_p13), %s733_s20, 512  }
 0x364   : > { %1112 = vsyncadd (%p901_p13), %s733_s20, 4294966784  ;;  %s24_s29 = sadd.s32 1, %s1135_s29   ;;  %s1415_s21 = sld [smem:[#allocation13_spill]] }
 0x365   : > { %p21_p0 = scmp.ge.s32.totalorder %s24_s29, 4   ;;  %s1416_s24 = smov %s1119_s25 }
 0x366   : > { %s1417_s25 = smov %s1123_s26  ;;  %s1418_s26 = smov %s1291_s30 }
 0x367   : > { %s1419_s27 = smov %s1131_s28  ;;  %23 = sbr.rel (!%p21_p0) target bundleno = 10 (0xa), region = 109 }
 0x36a   : > { %s1420_s28 = smov %s1415_s21 }
 0x36c   :  { %738 = vsyncpa [#allocation4], 1 }
 0x36d   :  { %740 = vsyncpa [#allocation4 + $0x1], 1 }
 0x36e   :  { %741 = vsyncpa [#allocation7], 1 }
 0x36f   :  { %742 = vsyncpa [#allocation5], 1 }
 0x370   :  { %744 = vsyncpa [#allocation5 + $0x1], 1 }

</bundles_post_ra>
